<compile_context>
chip_gen: v6e
topology: v6e:2x2x1
jax: 0.10.0
libtpu: 0.0.40
codegen_flags: <defaults>
</compile_context>

<pallas_src>
import jax
import jax.numpy as jnp
from jax import lax
from jax.experimental import pallas as pl
from jax.experimental.pallas import tpu as pltpu


def lstm_kernel(x_ref, wih_ref, whh_ref, b_ref, wfc_ref, bfc_ref, out_ref):
    # Shapes (all static):
    #   x_ref   : (T*B, I)   time-major, flattened
    #   wih_ref : (I, 4H)    W_ih^T
    #   whh_ref : (H, 4H)    W_hh^T
    #   b_ref   : (1, 4H)    b_ih + b_hh
    #   wfc_ref : (H, OP)    W_fc^T zero-padded to OP lanes
    #   bfc_ref : (1, OP)
    #   out_ref : (B, OP)
    B = out_ref.shape[0]
    H = whh_ref.shape[0]
    T = x_ref.shape[0] // B

    # ---- Phase 0 (off the serial path): input projection for all timesteps,
    #      one MXU call, bias folded in once.  Result lives in vregs only
    #      (no VMEM scratch round trip).
    #      NOTE: K=I=2 barely uses MXU depth; acceptable since it is off the
    #      recurrence chain (could be I broadcast FMAs on the VPU instead). ----
    xw_flat = (jnp.dot(x_ref[...], wih_ref[...],
                       preferred_element_type=jnp.float32)
               + b_ref[...])                      # (T*B, 4H)

    whh = whh_ref[...]                            # loop-invariant weight load

    # ---- Recurrence: only h @ W_hh^T remains on the serial path.
    #      Static Python loop => static slices of xw_flat (fine at T=8).
    #      TODO(synk): at large T, switch to a rolled fori_loop with
    #      unroll=4..8 + lax.dynamic_slice (or a time-chunk grid axis) to
    #      avoid program-size / vreg-pressure blowup. ----
    h = jnp.zeros((B, H), jnp.float32)
    c = jnp.zeros((B, H), jnp.float32)
    for t in range(T):
        gates = (jnp.dot(h, whh, preferred_element_type=jnp.float32)
                 + xw_flat[t * B:(t + 1) * B, :])  # (B, 4H), static slice
        sig = jax.nn.sigmoid(gates)                # whole-vreg EUP
        tah = jnp.tanh(gates)                      # whole-vreg EUP
        i_g = sig[:, 0 * H:1 * H]
        f_g = sig[:, 1 * H:2 * H]
        g_g = tah[:, 2 * H:3 * H]
        o_g = sig[:, 3 * H:4 * H]
        c = f_g * c + i_g * g_g
        h = o_g * jnp.tanh(c)

    # ---- Final FC on last hidden state (lane-dense, padded to OP lanes). ----
    out_ref[...] = (jnp.dot(h, wfc_ref[...],
                            preferred_element_type=jnp.float32)
                    + bfc_ref[...])


def base_lstm_forward(x, params):
    """x: (B, T, I) float32 (batch_first, like PyTorch). Returns (B, O)."""
    B, T, I = x.shape
    H = params["w_hh"].shape[1]
    O = params["w_fc"].shape[0]
    OP = max(128, ((O + 127) // 128) * 128)       # lane-dense padded output

    wih_t = params["w_ih"].T.astype(jnp.float32)               # (I, 4H)
    whh_t = params["w_hh"].T.astype(jnp.float32)               # (H, 4H)
    b = (params["b_ih"] + params["b_hh"]).reshape(1, 4 * H).astype(jnp.float32)
    wfc_pad = jnp.zeros((H, OP), jnp.float32).at[:, :O].set(
        params["w_fc"].T.astype(jnp.float32))                  # (H, OP)
    bfc_pad = jnp.zeros((1, OP), jnp.float32).at[:, :O].set(
        params["b_fc"].astype(jnp.float32))                    # (1, OP)

    # Time-major, flattened: whole input projection becomes one matmul.
    # TODO(synk): at production T*B*I, skip this wrapper transpose (extra HBM
    # pass): keep x as (B,T,I), add a time-chunk grid axis ("arbitrary") with
    # persistent h/c scratch, and raise vmem_limit_bytes (critical on v7x's
    # 64 MiB VMEM / v6e's 32 MiB default scoped limit).
    x_flat = jnp.transpose(x, (1, 0, 2)).reshape(T * B, I).astype(jnp.float32)

    out_pad = pl.pallas_call(
        lstm_kernel,
        out_shape=jax.ShapeDtypeStruct((B, OP), jnp.float32),
        grid_spec=pltpu.PrefetchScalarGridSpec(
            num_scalar_prefetch=0,
            grid=(1,),                                  # single invocation
            in_specs=[
                pl.BlockSpec((T * B, I), lambda i: (0, 0)),   # x (flattened)
                pl.BlockSpec((I, 4 * H), lambda i: (0, 0)),   # W_ih^T
                pl.BlockSpec((H, 4 * H), lambda i: (0, 0)),   # W_hh^T
                pl.BlockSpec((1, 4 * H), lambda i: (0, 0)),   # bias
                pl.BlockSpec((H, OP), lambda i: (0, 0)),      # W_fc^T (padded)
                pl.BlockSpec((1, OP), lambda i: (0, 0)),      # b_fc   (padded)
            ],
            out_specs=pl.BlockSpec((B, OP), lambda i: (0, 0)),
        ),
        compiler_params=pltpu.CompilerParams(
            dimension_semantics=("arbitrary",)),
    )(x_flat, wih_t, whh_t, b, wfc_pad, bfc_pad)
    # TODO(synk): on v7x with large B, add a leading "parallel" batch-tile
    # grid axis (per-tile h/c) so both TensorCores run independent batch
    # shards of the recurrence; pure overhead at B=2, so omitted here.
    return out_pad[:, :O]


def init_params(key, input_size=2, hidden_size=32, output_size=2):
    """Deterministic PyTorch-style uniform(-1/sqrt(H), 1/sqrt(H)) init."""
    k = jax.random.split(key, 6)
    s = 1.0 / jnp.sqrt(hidden_size)
    u = lambda kk, shp: jax.random.uniform(kk, shp, jnp.float32, -s, s)
    return {
        "w_ih": u(k[0], (4 * hidden_size, input_size)),
        "w_hh": u(k[1], (4 * hidden_size, hidden_size)),
        "b_ih": u(k[2], (4 * hidden_size,)),
        "b_hh": u(k[3], (4 * hidden_size,)),
        "w_fc": u(k[4], (output_size, hidden_size)),
        "b_fc": u(k[5], (output_size,)),
    }


def reference_forward(x, params):
    """Pure-JAX reference of the PyTorch forward, for validation."""
    B, T, I = x.shape
    H = params["w_hh"].shape[1]
    wih_t = params["w_ih"].T
    whh_t = params["w_hh"].T
    b = params["b_ih"] + params["b_hh"]

    def step(carry, x_t):
        h, c = carry
        gates = x_t @ wih_t + h @ whh_t + b
        i_g = jax.nn.sigmoid(gates[:, 0 * H:1 * H])
        f_g = jax.nn.sigmoid(gates[:, 1 * H:2 * H])
        g_g = jnp.tanh(gates[:, 2 * H:3 * H])
        o_g = jax.nn.sigmoid(gates[:, 3 * H:4 * H])
        c = f_g * c + i_g * g_g
        h = o_g * jnp.tanh(c)
        return (h, c), None

    h0 = jnp.zeros((B, H), jnp.float32)
    c0 = jnp.zeros((B, H), jnp.float32)
    (h_last, _), _ = lax.scan(step, (h0, c0), jnp.transpose(x, (1, 0, 2)))
    return h_last @ params["w_fc"].T + params["b_fc"]


if __name__ == "__main__":
    B, T, I, H, O = 2, 8, 2, 32, 2
    key = jax.random.PRNGKey(0)
    kx, kp = jax.random.split(key)
    x = jax.random.normal(kx, (B, T, I), jnp.float32)
    params = init_params(kp, input_size=I, hidden_size=H, output_size=O)

    out = base_lstm_forward(x, params)
    out = jax.block_until_ready(out)

    ref = reference_forward(x, params)
    assert out.shape == (B, O)
    assert jnp.allclose(out, ref, atol=1e-5, rtol=1e-5), (out, ref)
    print("KERNEL_OK")
</pallas_src>

<mosaic_0001>
module attributes {stable_mosaic.version = 11 : i64} {
  func.func @lstm_kernel(%arg0: i32, %arg1: memref<16x2xf32, #tpu.memory_space<vmem>>, %arg2: memref<2x128xf32, #tpu.memory_space<vmem>>, %arg3: memref<32x128xf32, #tpu.memory_space<vmem>>, %arg4: memref<1x128xf32, #tpu.memory_space<vmem>>, %arg5: memref<32x128xf32, #tpu.memory_space<vmem>>, %arg6: memref<1x128xf32, #tpu.memory_space<vmem>>, %arg7: memref<2x128xf32, #tpu.memory_space<vmem>>) attributes {dimension_semantics = [#tpu.dimension_semantics<arbitrary>], iteration_bounds = array<i64: 1>, scalar_prefetch = 0 : i64, scratch_operands = 0 : i64, tpu.core_type = #tpu.core_type<tc>, window_params = [{pipeline_mode = #tpu.pipeline_mode<synchronous>, transform_indices = @transform_0, window_bounds = array<i64: 16, 2>}, {pipeline_mode = #tpu.pipeline_mode<synchronous>, transform_indices = @transform_1, window_bounds = array<i64: 2, 128>}, {pipeline_mode = #tpu.pipeline_mode<synchronous>, transform_indices = @transform_2, window_bounds = array<i64: 32, 128>}, {pipeline_mode = #tpu.pipeline_mode<synchronous>, transform_indices = @transform_3, window_bounds = array<i64: 1, 128>}, {pipeline_mode = #tpu.pipeline_mode<synchronous>, transform_indices = @transform_4, window_bounds = array<i64: 32, 128>}, {pipeline_mode = #tpu.pipeline_mode<synchronous>, transform_indices = @transform_5, window_bounds = array<i64: 1, 128>}, {pipeline_mode = #tpu.pipeline_mode<synchronous>, transform_indices = @transform_6, window_bounds = array<i64: 2, 128>}]} {
    %c0 = arith.constant 0 : index
    %c0_0 = arith.constant 0 : index
    %0 = vector.load %arg1[%c0, %c0_0] : memref<16x2xf32, #tpu.memory_space<vmem>>, vector<16x2xf32>
    %c0_1 = arith.constant 0 : index
    %c0_2 = arith.constant 0 : index
    %1 = vector.load %arg2[%c0_1, %c0_2] : memref<2x128xf32, #tpu.memory_space<vmem>>, vector<2x128xf32>
    %cst = arith.constant dense<0.000000e+00> : vector<16x128xf32>
    %2 = tpu.matmul %0, %1, %cst {dimension_numbers = #tpu.dot_dimension_numbers<[1], [0], [0], [1], [0, 0, 1, 1], [], []>} : vector<16x2xf32>, vector<2x128xf32>, vector<16x128xf32> -> vector<16x128xf32>
    %c0_3 = arith.constant 0 : index
    %c0_4 = arith.constant 0 : index
    %3 = vector.load %arg4[%c0_3, %c0_4] : memref<1x128xf32, #tpu.memory_space<vmem>>, vector<1x128xf32>
    %4 = vector.broadcast %3 : vector<1x128xf32> to vector<16x128xf32>
    %5 = arith.addf %2, %4 : vector<16x128xf32>
    %c0_5 = arith.constant 0 : index
    %c0_6 = arith.constant 0 : index
    %6 = vector.load %arg3[%c0_5, %c0_6] : memref<32x128xf32, #tpu.memory_space<vmem>>, vector<32x128xf32>
    %cst_7 = arith.constant 0.000000e+00 : f32
    %7 = vector.broadcast %cst_7 : f32 to vector<2x32xf32>
    %cst_8 = arith.constant 0.000000e+00 : f32
    %8 = vector.broadcast %cst_8 : f32 to vector<2x32xf32>
    %cst_9 = arith.constant dense<0.000000e+00> : vector<2x128xf32>
    %9 = tpu.matmul %7, %6, %cst_9 {dimension_numbers = #tpu.dot_dimension_numbers<[1], [0], [0], [1], [0, 0, 1, 1], [], []>} : vector<2x32xf32>, vector<32x128xf32>, vector<2x128xf32> -> vector<2x128xf32>
    %10 = vector.extract_strided_slice %5 {offsets = [0, 0], sizes = [2, 128], strides = [1, 1]} : vector<16x128xf32> to vector<2x128xf32>
    %11 = arith.addf %9, %10 : vector<2x128xf32>
    %12 = arith.negf %11 : vector<2x128xf32>
    %13 = math.exp %12 : vector<2x128xf32>
    %cst_10 = arith.constant 1.000000e+00 : f32
    %14 = vector.broadcast %cst_10 : f32 to vector<2x128xf32>
    %15 = arith.addf %14, %13 : vector<2x128xf32>
    %16 = arith.divf %14, %15 : vector<2x128xf32>
    %17 = math.tanh %11 : vector<2x128xf32>
    %18 = vector.extract_strided_slice %16 {offsets = [0, 0], sizes = [2, 32], strides = [1, 1]} : vector<2x128xf32> to vector<2x32xf32>
    %19 = vector.extract_strided_slice %16 {offsets = [0, 32], sizes = [2, 32], strides = [1, 1]} : vector<2x128xf32> to vector<2x32xf32>
    %20 = vector.extract_strided_slice %17 {offsets = [0, 64], sizes = [2, 32], strides = [1, 1]} : vector<2x128xf32> to vector<2x32xf32>
    %21 = vector.extract_strided_slice %16 {offsets = [0, 96], sizes = [2, 32], strides = [1, 1]} : vector<2x128xf32> to vector<2x32xf32>
    %22 = arith.mulf %19, %8 : vector<2x32xf32>
    %23 = arith.mulf %18, %20 : vector<2x32xf32>
    %24 = arith.addf %22, %23 : vector<2x32xf32>
    %25 = math.tanh %24 : vector<2x32xf32>
    %26 = arith.mulf %21, %25 : vector<2x32xf32>
    %cst_11 = arith.constant dense<0.000000e+00> : vector<2x128xf32>
    %27 = tpu.matmul %26, %6, %cst_11 {dimension_numbers = #tpu.dot_dimension_numbers<[1], [0], [0], [1], [0, 0, 1, 1], [], []>} : vector<2x32xf32>, vector<32x128xf32>, vector<2x128xf32> -> vector<2x128xf32>
    %28 = vector.extract_strided_slice %5 {offsets = [2, 0], sizes = [2, 128], strides = [1, 1]} : vector<16x128xf32> to vector<2x128xf32>
    %29 = arith.addf %27, %28 : vector<2x128xf32>
    %30 = arith.negf %29 : vector<2x128xf32>
    %31 = math.exp %30 : vector<2x128xf32>
    %cst_12 = arith.constant 1.000000e+00 : f32
    %32 = vector.broadcast %cst_12 : f32 to vector<2x128xf32>
    %33 = arith.addf %32, %31 : vector<2x128xf32>
    %34 = arith.divf %32, %33 : vector<2x128xf32>
    %35 = math.tanh %29 : vector<2x128xf32>
    %36 = vector.extract_strided_slice %34 {offsets = [0, 0], sizes = [2, 32], strides = [1, 1]} : vector<2x128xf32> to vector<2x32xf32>
    %37 = vector.extract_strided_slice %34 {offsets = [0, 32], sizes = [2, 32], strides = [1, 1]} : vector<2x128xf32> to vector<2x32xf32>
    %38 = vector.extract_strided_slice %35 {offsets = [0, 64], sizes = [2, 32], strides = [1, 1]} : vector<2x128xf32> to vector<2x32xf32>
    %39 = vector.extract_strided_slice %34 {offsets = [0, 96], sizes = [2, 32], strides = [1, 1]} : vector<2x128xf32> to vector<2x32xf32>
    %40 = arith.mulf %37, %24 : vector<2x32xf32>
    %41 = arith.mulf %36, %38 : vector<2x32xf32>
    %42 = arith.addf %40, %41 : vector<2x32xf32>
    %43 = math.tanh %42 : vector<2x32xf32>
    %44 = arith.mulf %39, %43 : vector<2x32xf32>
    %cst_13 = arith.constant dense<0.000000e+00> : vector<2x128xf32>
    %45 = tpu.matmul %44, %6, %cst_13 {dimension_numbers = #tpu.dot_dimension_numbers<[1], [0], [0], [1], [0, 0, 1, 1], [], []>} : vector<2x32xf32>, vector<32x128xf32>, vector<2x128xf32> -> vector<2x128xf32>
    %46 = vector.extract_strided_slice %5 {offsets = [4, 0], sizes = [2, 128], strides = [1, 1]} : vector<16x128xf32> to vector<2x128xf32>
    %47 = arith.addf %45, %46 : vector<2x128xf32>
    %48 = arith.negf %47 : vector<2x128xf32>
    %49 = math.exp %48 : vector<2x128xf32>
    %cst_14 = arith.constant 1.000000e+00 : f32
    %50 = vector.broadcast %cst_14 : f32 to vector<2x128xf32>
    %51 = arith.addf %50, %49 : vector<2x128xf32>
    %52 = arith.divf %50, %51 : vector<2x128xf32>
    %53 = math.tanh %47 : vector<2x128xf32>
    %54 = vector.extract_strided_slice %52 {offsets = [0, 0], sizes = [2, 32], strides = [1, 1]} : vector<2x128xf32> to vector<2x32xf32>
    %55 = vector.extract_strided_slice %52 {offsets = [0, 32], sizes = [2, 32], strides = [1, 1]} : vector<2x128xf32> to vector<2x32xf32>
    %56 = vector.extract_strided_slice %53 {offsets = [0, 64], sizes = [2, 32], strides = [1, 1]} : vector<2x128xf32> to vector<2x32xf32>
    %57 = vector.extract_strided_slice %52 {offsets = [0, 96], sizes = [2, 32], strides = [1, 1]} : vector<2x128xf32> to vector<2x32xf32>
    %58 = arith.mulf %55, %42 : vector<2x32xf32>
    %59 = arith.mulf %54, %56 : vector<2x32xf32>
    %60 = arith.addf %58, %59 : vector<2x32xf32>
    %61 = math.tanh %60 : vector<2x32xf32>
    %62 = arith.mulf %57, %61 : vector<2x32xf32>
    %cst_15 = arith.constant dense<0.000000e+00> : vector<2x128xf32>
    %63 = tpu.matmul %62, %6, %cst_15 {dimension_numbers = #tpu.dot_dimension_numbers<[1], [0], [0], [1], [0, 0, 1, 1], [], []>} : vector<2x32xf32>, vector<32x128xf32>, vector<2x128xf32> -> vector<2x128xf32>
    %64 = vector.extract_strided_slice %5 {offsets = [6, 0], sizes = [2, 128], strides = [1, 1]} : vector<16x128xf32> to vector<2x128xf32>
    %65 = arith.addf %63, %64 : vector<2x128xf32>
    %66 = arith.negf %65 : vector<2x128xf32>
    %67 = math.exp %66 : vector<2x128xf32>
    %cst_16 = arith.constant 1.000000e+00 : f32
    %68 = vector.broadcast %cst_16 : f32 to vector<2x128xf32>
    %69 = arith.addf %68, %67 : vector<2x128xf32>
    %70 = arith.divf %68, %69 : vector<2x128xf32>
    %71 = math.tanh %65 : vector<2x128xf32>
    %72 = vector.extract_strided_slice %70 {offsets = [0, 0], sizes = [2, 32], strides = [1, 1]} : vector<2x128xf32> to vector<2x32xf32>
    %73 = vector.extract_strided_slice %70 {offsets = [0, 32], sizes = [2, 32], strides = [1, 1]} : vector<2x128xf32> to vector<2x32xf32>
    %74 = vector.extract_strided_slice %71 {offsets = [0, 64], sizes = [2, 32], strides = [1, 1]} : vector<2x128xf32> to vector<2x32xf32>
    %75 = vector.extract_strided_slice %70 {offsets = [0, 96], sizes = [2, 32], strides = [1, 1]} : vector<2x128xf32> to vector<2x32xf32>
    %76 = arith.mulf %73, %60 : vector<2x32xf32>
    %77 = arith.mulf %72, %74 : vector<2x32xf32>
    %78 = arith.addf %76, %77 : vector<2x32xf32>
    %79 = math.tanh %78 : vector<2x32xf32>
    %80 = arith.mulf %75, %79 : vector<2x32xf32>
    %cst_17 = arith.constant dense<0.000000e+00> : vector<2x128xf32>
    %81 = tpu.matmul %80, %6, %cst_17 {dimension_numbers = #tpu.dot_dimension_numbers<[1], [0], [0], [1], [0, 0, 1, 1], [], []>} : vector<2x32xf32>, vector<32x128xf32>, vector<2x128xf32> -> vector<2x128xf32>
    %82 = vector.extract_strided_slice %5 {offsets = [8, 0], sizes = [2, 128], strides = [1, 1]} : vector<16x128xf32> to vector<2x128xf32>
    %83 = arith.addf %81, %82 : vector<2x128xf32>
    %84 = arith.negf %83 : vector<2x128xf32>
    %85 = math.exp %84 : vector<2x128xf32>
    %cst_18 = arith.constant 1.000000e+00 : f32
    %86 = vector.broadcast %cst_18 : f32 to vector<2x128xf32>
    %87 = arith.addf %86, %85 : vector<2x128xf32>
    %88 = arith.divf %86, %87 : vector<2x128xf32>
    %89 = math.tanh %83 : vector<2x128xf32>
    %90 = vector.extract_strided_slice %88 {offsets = [0, 0], sizes = [2, 32], strides = [1, 1]} : vector<2x128xf32> to vector<2x32xf32>
    %91 = vector.extract_strided_slice %88 {offsets = [0, 32], sizes = [2, 32], strides = [1, 1]} : vector<2x128xf32> to vector<2x32xf32>
    %92 = vector.extract_strided_slice %89 {offsets = [0, 64], sizes = [2, 32], strides = [1, 1]} : vector<2x128xf32> to vector<2x32xf32>
    %93 = vector.extract_strided_slice %88 {offsets = [0, 96], sizes = [2, 32], strides = [1, 1]} : vector<2x128xf32> to vector<2x32xf32>
    %94 = arith.mulf %91, %78 : vector<2x32xf32>
    %95 = arith.mulf %90, %92 : vector<2x32xf32>
    %96 = arith.addf %94, %95 : vector<2x32xf32>
    %97 = math.tanh %96 : vector<2x32xf32>
    %98 = arith.mulf %93, %97 : vector<2x32xf32>
    %cst_19 = arith.constant dense<0.000000e+00> : vector<2x128xf32>
    %99 = tpu.matmul %98, %6, %cst_19 {dimension_numbers = #tpu.dot_dimension_numbers<[1], [0], [0], [1], [0, 0, 1, 1], [], []>} : vector<2x32xf32>, vector<32x128xf32>, vector<2x128xf32> -> vector<2x128xf32>
    %100 = vector.extract_strided_slice %5 {offsets = [10, 0], sizes = [2, 128], strides = [1, 1]} : vector<16x128xf32> to vector<2x128xf32>
    %101 = arith.addf %99, %100 : vector<2x128xf32>
    %102 = arith.negf %101 : vector<2x128xf32>
    %103 = math.exp %102 : vector<2x128xf32>
    %cst_20 = arith.constant 1.000000e+00 : f32
    %104 = vector.broadcast %cst_20 : f32 to vector<2x128xf32>
    %105 = arith.addf %104, %103 : vector<2x128xf32>
    %106 = arith.divf %104, %105 : vector<2x128xf32>
    %107 = math.tanh %101 : vector<2x128xf32>
    %108 = vector.extract_strided_slice %106 {offsets = [0, 0], sizes = [2, 32], strides = [1, 1]} : vector<2x128xf32> to vector<2x32xf32>
    %109 = vector.extract_strided_slice %106 {offsets = [0, 32], sizes = [2, 32], strides = [1, 1]} : vector<2x128xf32> to vector<2x32xf32>
    %110 = vector.extract_strided_slice %107 {offsets = [0, 64], sizes = [2, 32], strides = [1, 1]} : vector<2x128xf32> to vector<2x32xf32>
    %111 = vector.extract_strided_slice %106 {offsets = [0, 96], sizes = [2, 32], strides = [1, 1]} : vector<2x128xf32> to vector<2x32xf32>
    %112 = arith.mulf %109, %96 : vector<2x32xf32>
    %113 = arith.mulf %108, %110 : vector<2x32xf32>
    %114 = arith.addf %112, %113 : vector<2x32xf32>
    %115 = math.tanh %114 : vector<2x32xf32>
    %116 = arith.mulf %111, %115 : vector<2x32xf32>
    %cst_21 = arith.constant dense<0.000000e+00> : vector<2x128xf32>
    %117 = tpu.matmul %116, %6, %cst_21 {dimension_numbers = #tpu.dot_dimension_numbers<[1], [0], [0], [1], [0, 0, 1, 1], [], []>} : vector<2x32xf32>, vector<32x128xf32>, vector<2x128xf32> -> vector<2x128xf32>
    %118 = vector.extract_strided_slice %5 {offsets = [12, 0], sizes = [2, 128], strides = [1, 1]} : vector<16x128xf32> to vector<2x128xf32>
    %119 = arith.addf %117, %118 : vector<2x128xf32>
    %120 = arith.negf %119 : vector<2x128xf32>
    %121 = math.exp %120 : vector<2x128xf32>
    %cst_22 = arith.constant 1.000000e+00 : f32
    %122 = vector.broadcast %cst_22 : f32 to vector<2x128xf32>
    %123 = arith.addf %122, %121 : vector<2x128xf32>
    %124 = arith.divf %122, %123 : vector<2x128xf32>
    %125 = math.tanh %119 : vector<2x128xf32>
    %126 = vector.extract_strided_slice %124 {offsets = [0, 0], sizes = [2, 32], strides = [1, 1]} : vector<2x128xf32> to vector<2x32xf32>
    %127 = vector.extract_strided_slice %124 {offsets = [0, 32], sizes = [2, 32], strides = [1, 1]} : vector<2x128xf32> to vector<2x32xf32>
    %128 = vector.extract_strided_slice %125 {offsets = [0, 64], sizes = [2, 32], strides = [1, 1]} : vector<2x128xf32> to vector<2x32xf32>
    %129 = vector.extract_strided_slice %124 {offsets = [0, 96], sizes = [2, 32], strides = [1, 1]} : vector<2x128xf32> to vector<2x32xf32>
    %130 = arith.mulf %127, %114 : vector<2x32xf32>
    %131 = arith.mulf %126, %128 : vector<2x32xf32>
    %132 = arith.addf %130, %131 : vector<2x32xf32>
    %133 = math.tanh %132 : vector<2x32xf32>
    %134 = arith.mulf %129, %133 : vector<2x32xf32>
    %cst_23 = arith.constant dense<0.000000e+00> : vector<2x128xf32>
    %135 = tpu.matmul %134, %6, %cst_23 {dimension_numbers = #tpu.dot_dimension_numbers<[1], [0], [0], [1], [0, 0, 1, 1], [], []>} : vector<2x32xf32>, vector<32x128xf32>, vector<2x128xf32> -> vector<2x128xf32>
    %136 = vector.extract_strided_slice %5 {offsets = [14, 0], sizes = [2, 128], strides = [1, 1]} : vector<16x128xf32> to vector<2x128xf32>
    %137 = arith.addf %135, %136 : vector<2x128xf32>
    %138 = arith.negf %137 : vector<2x128xf32>
    %139 = math.exp %138 : vector<2x128xf32>
    %cst_24 = arith.constant 1.000000e+00 : f32
    %140 = vector.broadcast %cst_24 : f32 to vector<2x128xf32>
    %141 = arith.addf %140, %139 : vector<2x128xf32>
    %142 = arith.divf %140, %141 : vector<2x128xf32>
    %143 = math.tanh %137 : vector<2x128xf32>
    %144 = vector.extract_strided_slice %142 {offsets = [0, 0], sizes = [2, 32], strides = [1, 1]} : vector<2x128xf32> to vector<2x32xf32>
    %145 = vector.extract_strided_slice %142 {offsets = [0, 32], sizes = [2, 32], strides = [1, 1]} : vector<2x128xf32> to vector<2x32xf32>
    %146 = vector.extract_strided_slice %143 {offsets = [0, 64], sizes = [2, 32], strides = [1, 1]} : vector<2x128xf32> to vector<2x32xf32>
    %147 = vector.extract_strided_slice %142 {offsets = [0, 96], sizes = [2, 32], strides = [1, 1]} : vector<2x128xf32> to vector<2x32xf32>
    %148 = arith.mulf %145, %132 : vector<2x32xf32>
    %149 = arith.mulf %144, %146 : vector<2x32xf32>
    %150 = arith.addf %148, %149 : vector<2x32xf32>
    %151 = math.tanh %150 : vector<2x32xf32>
    %152 = arith.mulf %147, %151 : vector<2x32xf32>
    %c0_25 = arith.constant 0 : index
    %c0_26 = arith.constant 0 : index
    %153 = vector.load %arg5[%c0_25, %c0_26] : memref<32x128xf32, #tpu.memory_space<vmem>>, vector<32x128xf32>
    %cst_27 = arith.constant dense<0.000000e+00> : vector<2x128xf32>
    %154 = tpu.matmul %152, %153, %cst_27 {dimension_numbers = #tpu.dot_dimension_numbers<[1], [0], [0], [1], [0, 0, 1, 1], [], []>} : vector<2x32xf32>, vector<32x128xf32>, vector<2x128xf32> -> vector<2x128xf32>
    %c0_28 = arith.constant 0 : index
    %c0_29 = arith.constant 0 : index
    %155 = vector.load %arg6[%c0_28, %c0_29] : memref<1x128xf32, #tpu.memory_space<vmem>>, vector<1x128xf32>
    %156 = vector.broadcast %155 : vector<1x128xf32> to vector<2x128xf32>
    %157 = arith.addf %154, %156 : vector<2x128xf32>
    %c0_30 = arith.constant 0 : index
    %c0_31 = arith.constant 0 : index
    %158 = vector.load %arg7[%c0_30, %c0_31] : memref<2x128xf32, #tpu.memory_space<vmem>>, vector<2x128xf32>
    tpu.vector_store %arg7[%c0_30, %c0_31], %157 {strides = array<i32>} : memref<2x128xf32, #tpu.memory_space<vmem>>, vector<2x128xf32>,
    return
  }
  func.func @transform_0(%arg0: i32) -> (i32, i32) {
    %c0_i32 = arith.constant 0 : i32
    %c0_i32_0 = arith.constant 0 : i32
    %c0_i32_1 = arith.constant 0 : i32
    return %c0_i32, %c0_i32_0 : i32, i32
  }
  func.func @transform_1(%arg0: i32) -> (i32, i32) {
    %c0_i32 = arith.constant 0 : i32
    %c0_i32_0 = arith.constant 0 : i32
    %c0_i32_1 = arith.constant 0 : i32
    return %c0_i32, %c0_i32_0 : i32, i32
  }
  func.func @transform_2(%arg0: i32) -> (i32, i32) {
    %c0_i32 = arith.constant 0 : i32
    %c0_i32_0 = arith.constant 0 : i32
    %c0_i32_1 = arith.constant 0 : i32
    return %c0_i32, %c0_i32_0 : i32, i32
  }
  func.func @transform_3(%arg0: i32) -> (i32, i32) {
    %c0_i32 = arith.constant 0 : i32
    %c0_i32_0 = arith.constant 0 : i32
    %c0_i32_1 = arith.constant 0 : i32
    return %c0_i32, %c0_i32_0 : i32, i32
  }
  func.func @transform_4(%arg0: i32) -> (i32, i32) {
    %c0_i32 = arith.constant 0 : i32
    %c0_i32_0 = arith.constant 0 : i32
    %c0_i32_1 = arith.constant 0 : i32
    return %c0_i32, %c0_i32_0 : i32, i32
  }
  func.func @transform_5(%arg0: i32) -> (i32, i32) {
    %c0_i32 = arith.constant 0 : i32
    %c0_i32_0 = arith.constant 0 : i32
    %c0_i32_1 = arith.constant 0 : i32
    return %c0_i32, %c0_i32_0 : i32, i32
  }
  func.func @transform_6(%arg0: i32) -> (i32, i32) {
    %c0_i32 = arith.constant 0 : i32
    %c0_i32_0 = arith.constant 0 : i32
    %c0_i32_1 = arith.constant 0 : i32
    return %c0_i32, %c0_i32_0 : i32, i32
  }
}

</mosaic_0001>

<bundles_post_ra>
// kernel: tpu_custom_call.1
= control target key start
LH: loop header
LB: loop body
LE: loop exit
PB: predicated region body
PF: predicated region fallthrough
CT: control target
= control target key end

     0   :  { %11 = vsyncpa [#allocation3], 0  ;;  %s1587_s0 = inlined_call_operand.vmem [shape: f32[16,2], index: 0, kind: input, shape index: {}]   ;;  %s1588_s1 = inlined_call_operand.vmem [shape: f32[2,128], index: 1, kind: input, shape index: {}]   ;;  %s1589_s2 = inlined_call_operand.hbm [shape: f32[32,128], index: 2, kind: input, shape index: {}]   ;;  %s1590_s3 = inlined_call_operand.vmem [shape: f32[1,128], index: 3, kind: input, shape index: {}]   ;;  %s1591_s4 = inlined_call_operand.hbm [shape: f32[32,128], index: 4, kind: input, shape index: {}]   ;;  %s1592_s5 = inlined_call_operand.vmem [shape: f32[1,128], index: 5, kind: input, shape index: {}]   ;;  %s1593_s6 = inlined_call_operand.hbm [shape: f32[2,128], index: 6, kind: output, shape index: {}]  }
   0x1   :  { %12 = vsyncpa [#allocation6], 0 }
   0x2   :  { %13 = vsyncpa [#allocation4], 0  ;;  %s1372_s21 = smov [#allocation2]  }
   0x3   :  { %s23_s22 = sshll.u32 %s1372_s21, 4  ;;  %s24_s22 = int_to_ptr.vmem [resolvable:$true] %s23_s22 }
   0x4   :  { %s1314_s23 = scalar_lea.vmem %s24_s22, 512  ;;  %p1319_p1 = scmp.lt.s32.totalorder %s24_s22, %s24_s22 }
   0x5   :  { %p1315_p0 = scmp.ne.s32.totalorder %s24_s22, %s1314_s23  ;;  %p1320_p2 = scmp.lt.s32.totalorder %s1314_s23, %s1314_s23 }
   0x7   :  { %p1321_p3 = por %p1320_p2, %p1319_p1 }
   0x9   :  { %p1322_p4 = pnand %p1321_p3, %p1315_p0 }
   0xb   :  { %1325 = shalt.err (!%p1322_p4)
}
   0xc   :  { %s1373_s24 = smov 128   ;;  %s1374_s25 = smov 8  }
   0xd   :  { %29 = dma.hbm_to_vmem [thread:$0]  %s1589_s2, 512, %s24_s22, [#allocation3], %s1373_s24, %s1373_s24, %s1374_s25  }
   0xe   :  { %s1375_s28 = smov [#allocation5]  }
   0xf   :  { %s37_s29 = sshll.u32 %s1375_s28, 4  ;;  %s38_s29 = int_to_ptr.vmem [resolvable:$true] %s37_s29 }
  0x10   :  { %s1334_s30 = scalar_lea.vmem %s38_s29, 512  ;;  %p1339_p6 = scmp.lt.s32.totalorder %s38_s29, %s38_s29 }
  0x11   :  { %p1335_p5 = scmp.ne.s32.totalorder %s38_s29, %s1334_s30  ;;  %p1340_p7 = scmp.lt.s32.totalorder %s1334_s30, %s1334_s30 }
  0x13   :  { %p1341_p8 = por %p1340_p7, %p1339_p6 }
  0x15   :  { %p1342_p9 = pnand %p1341_p8, %p1335_p5 }
  0x17   :  { %1345 = shalt.err (!%p1342_p9)
}
  0x18   :  { %43 = dma.hbm_to_vmem [thread:$0]  %s1591_s4, 512, %s38_s29, [#allocation6], %s1373_s24, %s1373_s24, %s1374_s25  }
  0x19   :  { %1366 = dma.done.wait [#allocation3], 512  }
  0x1a   :  { %1367 = vsyncadd [#allocation3], 4294966784 }
  0x1b   :  { %1368 = dma.done.wait [#allocation6], 512  }
  0x1c   :  { %1369 = vsyncadd [#allocation6], 4294966784  ;;  %v1376_v0 = vmov 0.0   ;;  %vm1377_vm0 = vmmov 0   ;;  %vm69_vm1 = vcmask 1041408   ;;  %vm62_vm2 = vcmask 15360  }
  0x1d   :  { %1134 = vmatprep.subr.mxu1 %v1376_v0  ;;  %1142 = vmatprep.mubr.msk.f32.mxu1 %vm1377_vm0, %v1376_v0  ;;  %v54_v1 = vld [vmem:[%s1588_s1] sm:$0x3]  ;;  %v1428_v2 = vld [vmem:[#allocation2 + $0x18] sm:$0xff]  ;;  %v53_v4 = vld [vmem:[%s1587_s0 + $0x8] sm:$0xff]  ;;  %s1378_s13 = smov 64   ;;  %vm152_vm3 = vcmask 261120  }
  0x1e   :  { %v52_v3 = vld [vmem:[%s1587_s0] sm:$0xff]  ;;  %1129 = vmatprep.subr.msk.mxu0 %vm69_vm1, %v54_v1  ;;  %1135 = vmatpush3.msra.mxu1 %v1428_v2  ;;  %v1437_v5 = vld [vmem:[#allocation2 + $0x10] sm:$0xff]  ;;  %v1440_v6 = vld [vmem:[#allocation2 + $0x8] sm:$0xff]  ;;  %s1380_s16 = smov [#allocation7]  }
  0x1f   :  { %1130 = vmatpush3.msk.msra.mxu0 %vm69_vm1, %v54_v1  ;;  %1131 = vmatprep.mubr.msk.f32.mxu0 %vm62_vm2, %v52_v3  ;;  %v1445_v7 = vld [vmem:[#allocation2] sm:$0xff]  ;;  %s1050_s17 = sshll.u32 %s1380_s16, 4  ;;  %s1051_s17 = int_to_ptr.vmem [resolvable:$true] %s1050_s17 }
  0x20   :  { %1136 = vmatprep.subr.mxu1 %v1376_v0  ;;  %1132 = vmatmul.mubr.msk.f32.vlgmr.msra.gmra.mxu0 %vm62_vm2, %v53_v4  ;;  %v1060_v8 = vld [vmem:[%s1590_s3] ss:$0 sm:$0xff]  ;;  %s1379_s3 = smov 32   ;;  %s1346_s18 = scalar_lea.vmem %s1051_s17, 32 }
  0x21   :  { %1137 = vmatpush3.msra.mxu1 %v1437_v5  ;;  %1145 = vmatprep.subr.mxu0 %v1376_v0  ;;  %p1347_p10 = scmp.ne.s32.totalorder %s1051_s17, %s1346_s18  ;;  %p1351_p11 = scmp.lt.s32.totalorder %s1051_s17, %s1051_s17 }
  0x22   :  { %1138 = vmatprep.subr.mxu1 %v1376_v0  ;;  %1146 = vmatpush3.msra.mxu0 %v1428_v2  ;;  %p1352_p12 = scmp.lt.s32.totalorder %s1346_s18, %s1346_s18 }
  0x23   :  { %1139 = vmatpush3.msra.mxu1 %v1440_v6  ;;  %1147 = vmatprep.subr.mxu0 %v1376_v0 }
  0x24   :  { %1140 = vmatprep.subr.mxu1 %v1376_v0  ;;  %1148 = vmatpush3.msra.mxu0 %v1437_v5  ;;  %p1353_p13 = por %p1352_p12, %p1351_p11 }
  0x25   :  { %1141 = vmatpush3.msra.mxu1 %v1445_v7  ;;  %1149 = vmatprep.subr.mxu0 %v1376_v0 }
  0x26   :  { %1143 = vmatmul.mubr.f32.vlgmr.msra.gmra.mxu1 %v1376_v0  ;;  %1150 = vmatpush3.msra.mxu0 %v1440_v6  ;;  %p1354_p0 = pnand %p1353_p13, %p1347_p10 }
  0x27   :  { %1151 = vmatprep.subr.mxu0 %v1376_v0  ;;  %1153 = vmatprep.mubr.msk.f32.mxu0 %vm1377_vm0, %v1376_v0 }
  0x28   :  { %1152 = vmatpush3.msra.mxu0 %v1445_v7  ;;  %1156 = vmatprep.subr.mxu1 %v1376_v0 }
  0x29   :  { %1157 = vmatpush3.msra.mxu1 %v1428_v2  ;;  %1164 = vmatprep.mubr.msk.f32.mxu1 %vm1377_vm0, %v1376_v0 }
  0x2a   :  { %1158 = vmatprep.subr.mxu1 %v1376_v0  ;;  %1167 = vmatprep.subr.mxu0 %v1376_v0 }
  0x2b   :  { %1159 = vmatpush3.msra.mxu1 %v1437_v5 }
  0x2c   :  { %1160 = vmatprep.subr.mxu1 %v1376_v0 }
  0x2d   :  { %1161 = vmatpush3.msra.mxu1 %v1440_v6 }
  0x2e   :  { %1162 = vmatprep.subr.mxu1 %v1376_v0 }
  0x2f   :  { %1163 = vmatpush3.msra.mxu1 %v1445_v7 }
  0x30   :  { %1178 = vmatprep.subr.mxu1 %v1376_v0 }
  0xe0   :  { %v1133_v9 = vpop.f32.mrf.mxu0 }
  0xe1   :  { %v1475_v10 = vadd.f32 %v1133_v9, %v1060_v8 }
  0xe2   :  { %v139_v11 = vpop.f32.mrf.mxu0 }
  0xe3   :  { %v1477_v12 = vadd.f32 %v1060_v8, %v139_v11 }
  0xe5   :  { %v254_v30 = vrot.slane %v1477_v12, 2  ;;  %v355_v48 = vrot.slane %v1477_v12, 4  ;;  %v456_v4 = vrot.slane %v1477_v12, 6 }
  0xe6   :  { %v222_v13 = vpop.f32.mrf.mxu1 }
  0xe7   :  { %v223_v14 = vadd.f32 %v222_v13, %v1477_v12 }
  0xe8   :  { %v1144_v15 = vpop.f32.mrf.mxu1 }
  0xe9   :  { %1242 = vtanh.f32 %v223_v14  ;;  %v1064_v17 = vmul.f32 -1.442695, %v223_v14 }
  0xeb   :  { %1244 = vpow2.f32 %v1064_v17 }
  0xf6   :  { %v1243_v16 = vpop.eup %1242 }
  0xf7   :  { %235 = vrot.lane.b32.xlu0 %v1243_v16, %s1378_s13 }
  0xf8   :  { %v1245_v18 = vpop.eup %1244 }
  0xf9   :  { %v229_v19 = vadd.f32 1.0, %v1245_v18 }
  0xfb   :  { %1246 = vrcp.f32 %v229_v19 }
 0x108   :  { %v1247_v20 = vpop.eup %1246 }
 0x109   :  { %v233_v23 = vmul.f32 0.0, %v1247_v20 }
 0x169   :  { %v236_v21 = vpop.permute.xlu0 %235 }
 0x16a   :  { %v238_v22 = vmul.f32 %v1247_v20, %v236_v21 }
 0x16c   :  { %240 = vrot.lane.b32.xlu0 %v238_v22, %s1379_s3 }
 0x1de   :  { %v241_v24 = vpop.permute.xlu0 %240 }
 0x1df   :  { %v243_v25 = vadd.f32 %v241_v24, %v233_v23 }
 0x1e1   :  { %1248 = vtanh.f32 %v243_v25 }
 0x1ee   :  { %v1249_v26 = vpop.eup %1248 }
 0x1ef   :  { %246 = vrot.lane.b32.xlu1 %v1249_v26, %s1378_s13 }
 0x261   :  { %v247_v27 = vpop.permute.xlu1 %246 }
 0x262   :  { %v249_v28 = vmul.f32 %v1247_v20, %v247_v27 }
 0x264   :  { %251 = vrot.lane.b32.xlu1 %v249_v28, %s1379_s3 }
 0x2d6   :  { %v252_v29 = vpop.permute.xlu1 %251 }
 0x2d7   :  { %1154 = vmatmul.mubr.msk.f32.vlgmr.msra.gmra.mxu0 %vm152_vm3, %v252_v29 }
 0x2d8   :  { %1168 = vmatpush3.msra.mxu0 %v1428_v2  ;;  %1175 = vmatprep.mubr.msk.f32.mxu0 %vm1377_vm0, %v1376_v0 }
 0x2d9   :  { %1169 = vmatprep.subr.mxu0 %v1376_v0 }
 0x2da   :  { %1170 = vmatpush3.msra.mxu0 %v1437_v5 }
 0x2db   :  { %1171 = vmatprep.subr.mxu0 %v1376_v0 }
 0x2dc   :  { %1172 = vmatpush3.msra.mxu0 %v1440_v6 }
 0x2dd   :  { %1173 = vmatprep.subr.mxu0 %v1376_v0 }
 0x2de   :  { %1174 = vmatpush3.msra.mxu0 %v1445_v7 }
 0x2df   :  { %1189 = vmatprep.subr.mxu0 %v1376_v0 }
 0x397   :  { %v324_v31 = vpop.f32.mrf.mxu0 }
 0x398   :  { %v325_v32 = vadd.f32 %v324_v31, %v254_v30 }
 0x399   :  { %v1155_v33 = vpop.f32.mrf.mxu0 }
 0x39a   :  { %1250 = vtanh.f32 %v325_v32  ;;  %v1066_v35 = vmul.f32 -1.442695, %v325_v32 }
 0x39c   :  { %1252 = vpow2.f32 %v1066_v35 }
 0x3a7   :  { %v1251_v34 = vpop.eup %1250 }
 0x3a8   :  { %337 = vrot.lane.b32.xlu0 %v1251_v34, %s1378_s13 }
 0x3a9   :  { %v1253_v36 = vpop.eup %1252 }
 0x3aa   :  { %v331_v37 = vadd.f32 1.0, %v1253_v36 }
 0x3ac   :  { %1254 = vrcp.f32 %v331_v37 }
 0x3b9   :  { %v1255_v38 = vpop.eup %1254 }
 0x3ba   :  { %v335_v41 = vmul.f32 %v1255_v38, %v243_v25 }
 0x41a   :  { %v338_v39 = vpop.permute.xlu0 %337 }
 0x41b   :  { %v340_v40 = vmul.f32 %v1255_v38, %v338_v39 }
 0x41d   :  { %342 = vrot.lane.b32.xlu1 %v340_v40, %s1379_s3 }
 0x48f   :  { %v343_v42 = vpop.permute.xlu1 %342 }
 0x490   :  { %v345_v43 = vadd.f32 %v343_v42, %v335_v41 }
 0x492   :  { %1256 = vtanh.f32 %v345_v43 }
 0x49f   :  { %v1257_v44 = vpop.eup %1256 }
 0x4a0   :  { %348 = vrot.lane.b32.xlu0 %v1257_v44, %s1378_s13 }
 0x512   :  { %v349_v45 = vpop.permute.xlu0 %348 }
 0x513   :  { %v351_v46 = vmul.f32 %v1255_v38, %v349_v45 }
 0x515   :  { %353 = vrot.lane.b32.xlu1 %v351_v46, %s1379_s3 }
 0x587   :  { %v354_v47 = vpop.permute.xlu1 %353 }
 0x588   :  { %1165 = vmatmul.mubr.msk.f32.vlgmr.msra.gmra.mxu1 %vm152_vm3, %v354_v47 }
 0x589   :  { %1179 = vmatpush3.msra.mxu1 %v1428_v2  ;;  %1186 = vmatprep.mubr.msk.f32.mxu1 %vm1377_vm0, %v1376_v0 }
 0x58a   :  { %1180 = vmatprep.subr.mxu1 %v1376_v0 }
 0x58b   :  { %1181 = vmatpush3.msra.mxu1 %v1437_v5 }
 0x58c   :  { %1182 = vmatprep.subr.mxu1 %v1376_v0 }
 0x58d   :  { %1183 = vmatpush3.msra.mxu1 %v1440_v6 }
 0x58e   :  { %1184 = vmatprep.subr.mxu1 %v1376_v0 }
 0x58f   :  { %1185 = vmatpush3.msra.mxu1 %v1445_v7 }
 0x590   :  { %1200 = vmatprep.subr.mxu1 %v1376_v0 }
 0x648   :  { %v425_v49 = vpop.f32.mrf.mxu1 }
 0x649   :  { %v426_v50 = vadd.f32 %v425_v49, %v355_v48 }
 0x64a   :  { %v1166_v51 = vpop.f32.mrf.mxu1 }
 0x64b   :  { %1258 = vtanh.f32 %v426_v50  ;;  %v1068_v53 = vmul.f32 -1.442695, %v426_v50 }
 0x64d   :  { %1260 = vpow2.f32 %v1068_v53 }
 0x658   :  { %v1259_v52 = vpop.eup %1258 }
 0x659   :  { %438 = vrot.lane.b32.xlu0 %v1259_v52, %s1378_s13 }
 0x65a   :  { %v1261_v54 = vpop.eup %1260 }
 0x65b   :  { %v432_v55 = vadd.f32 1.0, %v1261_v54 }
 0x65d   :  { %1262 = vrcp.f32 %v432_v55 }
 0x66a   :  { %v1263_v56 = vpop.eup %1262 }
 0x66b   :  { %v436_v59 = vmul.f32 %v1263_v56, %v345_v43  ;;  %v657_v43 = vrot.slane %v1475_v10, 2 }
 0x6cb   :  { %v439_v57 = vpop.permute.xlu0 %438 }
 0x6cc   :  { %v441_v58 = vmul.f32 %v1263_v56, %v439_v57  ;;  %v758_v57 = vrot.slane %v1475_v10, 4 }
 0x6ce   :  { %443 = vrot.lane.b32.xlu1 %v441_v58, %s1379_s3 }
 0x740   :  { %v444_v60 = vpop.permute.xlu1 %443 }
 0x741   :  { %v446_v61 = vadd.f32 %v444_v60, %v436_v59 }
 0x743   :  { %1264 = vtanh.f32 %v446_v61 }
 0x750   :  { %v1265_v62 = vpop.eup %1264 }
 0x751   :  { %449 = vrot.lane.b32.xlu0 %v1265_v62, %s1378_s13 }
 0x7c3   :  { %v450_v63 = vpop.permute.xlu0 %449 }
 0x7c4   :  { %v452_v1 = vmul.f32 %v1263_v56, %v450_v63 }
 0x7c6   :  { %454 = vrot.lane.b32.xlu1 %v452_v1, %s1379_s3 }
 0x838   :  { %v455_v3 = vpop.permute.xlu1 %454 }
 0x839   :  { %1176 = vmatmul.mubr.msk.f32.vlgmr.msra.gmra.mxu0 %vm152_vm3, %v455_v3 }
 0x83a   :  { %1190 = vmatpush3.msra.mxu0 %v1428_v2  ;;  %1197 = vmatprep.mubr.msk.f32.mxu0 %vm1377_vm0, %v1376_v0 }
 0x83b   :  { %1191 = vmatprep.subr.mxu0 %v1376_v0 }
 0x83c   :  { %1192 = vmatpush3.msra.mxu0 %v1437_v5 }
 0x83d   :  { %1193 = vmatprep.subr.mxu0 %v1376_v0 }
 0x83e   :  { %1194 = vmatpush3.msra.mxu0 %v1440_v6 }
 0x83f   :  { %1195 = vmatprep.subr.mxu0 %v1376_v0 }
 0x840   :  { %1196 = vmatpush3.msra.mxu0 %v1445_v7 }
 0x841   :  { %1211 = vmatprep.subr.mxu0 %v1376_v0 }
 0x8f9   :  { %v526_v8 = vpop.f32.mrf.mxu0 }
 0x8fa   :  { %v527_v9 = vadd.f32 %v526_v8, %v456_v4 }
 0x8fb   :  { %v1177_v11 = vpop.f32.mrf.mxu0 }
 0x8fc   :  { %1266 = vtanh.f32 %v527_v9  ;;  %v1070_v14 = vmul.f32 -1.442695, %v527_v9 }
 0x8fe   :  { %1268 = vpow2.f32 %v1070_v14 }
 0x909   :  { %v1267_v13 = vpop.eup %1266 }
 0x90a   :  { %539 = vrot.lane.b32.xlu0 %v1267_v13, %s1378_s13 }
 0x90b   :  { %v1269_v15 = vpop.eup %1268 }
 0x90c   :  { %v533_v16 = vadd.f32 1.0, %v1269_v15 }
 0x90e   :  { %1270 = vrcp.f32 %v533_v16 }
 0x91b   :  { %v1271_v17 = vpop.eup %1270 }
 0x91c   :  { %v537_v20 = vmul.f32 %v1271_v17, %v446_v61 }
 0x97c   :  { %v540_v18 = vpop.permute.xlu0 %539 }
 0x97d   :  { %v542_v19 = vmul.f32 %v1271_v17, %v540_v18  ;;  %v859_v18 = vrot.slane %v1475_v10, 6 }
 0x97f   :  { %544 = vrot.lane.b32.xlu1 %v542_v19, %s1379_s3 }
 0x9f1   :  { %v545_v21 = vpop.permute.xlu1 %544 }
 0x9f2   :  { %v547_v12 = vadd.f32 %v545_v21, %v537_v20 }
 0x9f4   :  { %1272 = vtanh.f32 %v547_v12 }
 0xa01   :  { %v1273_v22 = vpop.eup %1272 }
 0xa02   :  { %550 = vrot.lane.b32.xlu0 %v1273_v22, %s1378_s13 }
 0xa74   :  { %v551_v23 = vpop.permute.xlu0 %550 }
 0xa75   :  { %v553_v24 = vmul.f32 %v1271_v17, %v551_v23 }
 0xa77   :  { %555 = vrot.lane.b32.xlu1 %v553_v24, %s1379_s3 }
 0xae9   :  { %v556_v25 = vpop.permute.xlu1 %555 }
 0xaea   :  { %1187 = vmatmul.mubr.msk.f32.vlgmr.msra.gmra.mxu1 %vm152_vm3, %v556_v25 }
 0xaeb   :  { %1201 = vmatpush3.msra.mxu1 %v1428_v2  ;;  %1208 = vmatprep.mubr.msk.f32.mxu1 %vm1377_vm0, %v1376_v0 }
 0xaec   :  { %1202 = vmatprep.subr.mxu1 %v1376_v0 }
 0xaed   :  { %1203 = vmatpush3.msra.mxu1 %v1437_v5 }
 0xaee   :  { %1204 = vmatprep.subr.mxu1 %v1376_v0 }
 0xaef   :  { %1205 = vmatpush3.msra.mxu1 %v1440_v6 }
 0xaf0   :  { %1206 = vmatprep.subr.mxu1 %v1376_v0 }
 0xaf1   :  { %1207 = vmatpush3.msra.mxu1 %v1445_v7 }
 0xaf2   :  { %1222 = vmatprep.subr.mxu1 %v1376_v0 }
 0xbaa   :  { %v625_v26 = vpop.f32.mrf.mxu1 }
 0xbab   :  { %v626_v27 = vadd.f32 %v625_v26, %v1475_v10 }
 0xbac   :  { %v1188_v28 = vpop.f32.mrf.mxu1 }
 0xbad   :  { %1274 = vtanh.f32 %v626_v27  ;;  %v1072_v30 = vmul.f32 -1.442695, %v626_v27 }
 0xbaf   :  { %1276 = vpow2.f32 %v1072_v30  ;;  %v960_v30 = vld [vmem:[#allocation5 + $0x18] sm:$0xff] }
 0xbba   :  { %v1275_v29 = vpop.eup %1274 }
 0xbbb   :  { %638 = vrot.lane.b32.xlu0 %v1275_v29, %s1378_s13 }
 0xbbc   :  { %v1277_v31 = vpop.eup %1276 }
 0xbbd   :  { %v632_v32 = vadd.f32 1.0, %v1277_v31  ;;  %v959_v31 = vld [vmem:[#allocation5 + $0x10] sm:$0xff] }
 0xbbf   :  { %1278 = vrcp.f32 %v632_v32  ;;  %v958_v32 = vld [vmem:[#allocation5 + $0x8] sm:$0xff] }
 0xbcc   :  { %v1279_v33 = vpop.eup %1278 }
 0xbcd   :  { %v636_v36 = vmul.f32 %v1279_v33, %v547_v12 }
 0xc2d   :  { %v639_v34 = vpop.permute.xlu0 %638 }
 0xc2e   :  { %v641_v35 = vmul.f32 %v1279_v33, %v639_v34 }
 0xc30   :  { %643 = vrot.lane.b32.xlu1 %v641_v35, %s1379_s3 }
 0xca2   :  { %v644_v37 = vpop.permute.xlu1 %643 }
 0xca3   :  { %v646_v38 = vadd.f32 %v644_v37, %v636_v36 }
 0xca5   :  { %1280 = vtanh.f32 %v646_v38 }
 0xcb2   :  { %v1281_v39 = vpop.eup %1280 }
 0xcb3   :  { %649 = vrot.lane.b32.xlu0 %v1281_v39, %s1378_s13 }
 0xd25   :  { %v650_v40 = vpop.permute.xlu0 %649 }
 0xd26   :  { %v652_v41 = vmul.f32 %v1279_v33, %v650_v40  ;;  %v957_v33 = vld [vmem:[#allocation5] sm:$0xff] }
 0xd28   :  { %654 = vrot.lane.b32.xlu1 %v652_v41, %s1379_s3 }
 0xd9a   :  { %v655_v42 = vpop.permute.xlu1 %654 }
 0xd9b   :  { %1198 = vmatmul.mubr.msk.f32.vlgmr.msra.gmra.mxu0 %vm152_vm3, %v655_v42 }
 0xd9c   :  { %1212 = vmatpush3.msra.mxu0 %v1428_v2  ;;  %1219 = vmatprep.mubr.msk.f32.mxu0 %vm1377_vm0, %v1376_v0 }
 0xd9d   :  { %1213 = vmatprep.subr.mxu0 %v1376_v0 }
 0xd9e   :  { %1214 = vmatpush3.msra.mxu0 %v1437_v5 }
 0xd9f   :  { %1215 = vmatprep.subr.mxu0 %v1376_v0 }
 0xda0   :  { %1216 = vmatpush3.msra.mxu0 %v1440_v6 }
 0xda1   :  { %1217 = vmatprep.subr.mxu0 %v1376_v0 }
 0xda2   :  { %1218 = vmatpush3.msra.mxu0 %v1445_v7 }
 0xe5b   :  { %v727_v44 = vpop.f32.mrf.mxu0 }
 0xe5c   :  { %v728_v45 = vadd.f32 %v727_v44, %v657_v43 }
 0xe5d   :  { %v1199_v2 = vpop.f32.mrf.mxu0 }
 0xe5e   :  { %1282 = vtanh.f32 %v728_v45  ;;  %v1074_v47 = vmul.f32 -1.442695, %v728_v45 }
 0xe60   :  { %1284 = vpow2.f32 %v1074_v47 }
 0xe6b   :  { %v1283_v46 = vpop.eup %1282 }
 0xe6c   :  { %740 = vrot.lane.b32.xlu0 %v1283_v46, %s1378_s13 }
 0xe6d   :  { %v1285_v5 = vpop.eup %1284 }
 0xe6e   :  { %v734_v48 = vadd.f32 1.0, %v1285_v5 }
 0xe70   :  { %1286 = vrcp.f32 %v734_v48 }
 0xe7d   :  { %v1287_v49 = vpop.eup %1286 }
 0xe7e   :  { %v738_v7 = vmul.f32 %v1287_v49, %v646_v38  ;;  %v1079_v38 = vld [vmem:[%s1592_s5] ss:$0 sm:$0xff] }
 0xede   :  { %v741_v6 = vpop.permute.xlu0 %740 }
 0xedf   :  { %v743_v50 = vmul.f32 %v1287_v49, %v741_v6 }
 0xee1   :  { %745 = vrot.lane.b32.xlu1 %v743_v50, %s1379_s3 }
 0xf53   :  { %v746_v51 = vpop.permute.xlu1 %745 }
 0xf54   :  { %v748_v52 = vadd.f32 %v746_v51, %v738_v7 }
 0xf56   :  { %1288 = vtanh.f32 %v748_v52 }
 0xf63   :  { %v1289_v53 = vpop.eup %1288 }
 0xf64   :  { %751 = vrot.lane.b32.xlu0 %v1289_v53, %s1378_s13 }
 0xfd6   :  { %v752_v54 = vpop.permute.xlu0 %751 }
 0xfd7   :  { %v754_v55 = vmul.f32 %v1287_v49, %v752_v54 }
 0xfd9   :  { %756 = vrot.lane.b32.xlu1 %v754_v55, %s1379_s3 }
0x104b   :  { %v757_v56 = vpop.permute.xlu1 %756 }
0x104c   :  { %1209 = vmatmul.mubr.msk.f32.vlgmr.msra.gmra.mxu1 %vm152_vm3, %v757_v56 }
0x104d   :  { %1230 = vmatprep.mubr.msk.f32.mxu1 %vm1377_vm0, %v1376_v0  ;;  %1223 = vmatpush3.msra.mxu1 %v960_v30 }
0x104e   :  { %1224 = vmatprep.subr.mxu1 %v1376_v0 }
0x104f   :  { %1225 = vmatpush3.msra.mxu1 %v959_v31 }
0x1050   :  { %1226 = vmatprep.subr.mxu1 %v1376_v0 }
0x1051   :  { %1227 = vmatpush3.msra.mxu1 %v958_v32 }
0x1052   :  { %1228 = vmatprep.subr.mxu1 %v1376_v0 }
0x1053   :  { %1229 = vmatpush3.msra.mxu1 %v957_v33 }
0x110c   :  { %v828_v58 = vpop.f32.mrf.mxu1 }
0x110d   :  { %v829_v59 = vadd.f32 %v828_v58, %v758_v57 }
0x110e   :  { %v1210_v60 = vpop.f32.mrf.mxu1 }
0x110f   :  { %1290 = vtanh.f32 %v829_v59  ;;  %v1076_v62 = vmul.f32 -1.442695, %v829_v59 }
0x1111   :  { %1292 = vpow2.f32 %v1076_v62 }
0x111c   :  { %v1291_v61 = vpop.eup %1290 }
0x111d   :  { %841 = vrot.lane.b32.xlu0 %v1291_v61, %s1378_s13 }
0x111e   :  { %v1293_v63 = vpop.eup %1292 }
0x111f   :  { %v835_v1 = vadd.f32 1.0, %v1293_v63 }
0x1121   :  { %1294 = vrcp.f32 %v835_v1 }
0x112e   :  { %v1295_v3 = vpop.eup %1294 }
0x112f   :  { %v839_v9 = vmul.f32 %v1295_v3, %v748_v52 }
0x118f   :  { %v842_v4 = vpop.permute.xlu0 %841 }
0x1190   :  { %v844_v8 = vmul.f32 %v1295_v3, %v842_v4 }
0x1192   :  { %846 = vrot.lane.b32.xlu1 %v844_v8, %s1379_s3 }
0x1204   :  { %v847_v11 = vpop.permute.xlu1 %846 }
0x1205   :  { %v849_v13 = vadd.f32 %v847_v11, %v839_v9 }
0x1207   :  { %1296 = vtanh.f32 %v849_v13 }
0x1214   :  { %v1297_v14 = vpop.eup %1296 }
0x1215   :  { %852 = vrot.lane.b32.xlu0 %v1297_v14, %s1378_s13 }
0x1287   :  { %v853_v15 = vpop.permute.xlu0 %852 }
0x1288   :  { %v855_v16 = vmul.f32 %v1295_v3, %v853_v15 }
0x128a   :  { %857 = vrot.lane.b32.xlu1 %v855_v16, %s1379_s3 }
0x12fc   :  { %v858_v17 = vpop.permute.xlu1 %857 }
0x12fd   :  { %1220 = vmatmul.mubr.msk.f32.vlgmr.msra.gmra.mxu0 %vm152_vm3, %v858_v17 }
0x13bd   :  { %v929_v19 = vpop.f32.mrf.mxu0 }
0x13be   :  { %v930_v20 = vadd.f32 %v929_v19, %v859_v18 }
0x13bf   :  { %v1221_v21 = vpop.f32.mrf.mxu0 }
0x13c0   :  { %1298 = vtanh.f32 %v930_v20  ;;  %v1078_v22 = vmul.f32 -1.442695, %v930_v20 }
0x13c2   :  { %1300 = vpow2.f32 %v1078_v22 }
0x13cd   :  { %v1299_v12 = vpop.eup %1298 }
0x13ce   :  { %942 = vrot.lane.b32.xlu0 %v1299_v12, %s1378_s13 }
0x13cf   :  { %v1301_v23 = vpop.eup %1300 }
0x13d0   :  { %v936_v24 = vadd.f32 1.0, %v1301_v23 }
0x13d2   :  { %1302 = vrcp.f32 %v936_v24 }
0x13df   :  { %v1303_v25 = vpop.eup %1302 }
0x13e0   :  { %v940_v28 = vmul.f32 %v1303_v25, %v849_v13 }
0x1440   :  { %v943_v26 = vpop.permute.xlu0 %942 }
0x1441   :  { %v945_v27 = vmul.f32 %v1303_v25, %v943_v26 }
0x1443   :  { %947 = vrot.lane.b32.xlu1 %v945_v27, %s1379_s3 }
0x14b5   :  { %v948_v29 = vpop.permute.xlu1 %947 }
0x14b6   :  { %v950_v10 = vadd.f32 %v948_v29, %v940_v28 }
0x14b8   :  { %1304 = vtanh.f32 %v950_v10 }
0x14c5   :  { %v1305_v34 = vpop.eup %1304 }
0x14c6   :  { %953 = vrot.lane.b32.xlu0 %v1305_v34, %s1378_s13 }
0x1538   :  { %v954_v35 = vpop.permute.xlu0 %953 }
0x1539   :  { %v956_v36 = vmul.f32 %v1303_v25, %v954_v35 }
0x153b   :  { %969 = vrot.lane.b32.xlu1 %v956_v36, %s1379_s3 }
0x15ad   :  { %v970_v37 = vpop.permute.xlu1 %969 }
0x15ae   :  { %1231 = vmatmul.mubr.msk.f32.vlgmr.msra.gmra.mxu1 %vm152_vm3, %v970_v37 }
0x166e   :  { %v1039_v39 = vpop.f32.mrf.mxu1 }
0x166f   :  { %v1040_v40 = vadd.f32 %v1079_v38, %v1039_v39 }
0x1670   :  { %v1232_v0 = vpop.f32.mrf.mxu1 }
0x1671   :  { %1043 = vst [vmem:[#allocation7] sm:$0x3] %v1040_v40 }
0x1672   :  { %1357 = shalt.err (!%p1354_p0)
}
0x1673   :  { %1053 = dma.vmem_to_hbm [thread:$0]  %s1051_s17, 32, %s1593_s6, [#allocation4]  }
0x1674   :  { %1370 = dma.done.wait [#allocation4], 32  }
0x1675   :  { %1371 = vsyncadd [#allocation4], 4294967264 }
0x1676   :  { %1057 = vsyncpa [#allocation3], 1 }
0x1677   :  { %1058 = vsyncpa [#allocation6], 1 }
0x1678   :  { %1059 = vsyncpa [#allocation4], 1 }

</bundles_post_ra>
